<compile_context>
chip_gen: v7x
topology: tpu7x:2x2x1
jax: 0.10.0
libtpu: 0.0.40
codegen_flags: <defaults>
</compile_context>

<pallas_src>
import functools

import jax
import jax.numpy as jnp
from jax.experimental import pallas as pl
from jax.experimental.pallas import tpu as pltpu


# ----------------------------- Pallas kernel ------------------------------ #

def _emb_gather_kernel(sid_ref, w_ref, out_ref, *, tb):
    """Gather TB rows of the VMEM-resident table into one lane-dense tile.

    sid_ref: [B_pad] int32 in SMEM (scalar prefetch).
    w_ref:   [N, D_pad] full table, VMEM-resident (constant index_map).
    out_ref: [TB, D_pad] output tile for this grid step.
    """
    base = pl.program_id(0) * tb
    rows = []
    for j in range(tb):                      # static unroll, TB is small
        s = sid_ref[base + j]                # scalar read from SMEM
        rows.append(w_ref[pl.ds(s, 1), :])   # dynamic (1, D_pad) row slice
    # One full-tile, unmasked store (lane- and sublane-dense).
    out_ref[...] = jnp.concatenate(rows, axis=0)


def embedding_lookup(weight, sid, *, tb=8):
    """g = weight[sid] via a batched Pallas gather (TB sids per grid step)."""
    N, D = weight.shape
    B = sid.shape[0]
    itemsize = jnp.dtype(weight.dtype).itemsize

    # Lane-dense last dim (multiple of 128) and sublane-dense batch tile.
    d_pad = max(128, ((D + 127) // 128) * 128)
    b_pad = ((B + tb - 1) // tb) * tb

    w_pad = weight if d_pad == D else jnp.pad(weight, ((0, 0), (0, d_pad - D)))
    # Clamp indices: an out-of-range sid would drive an unchecked VMEM address.
    sid_c = jnp.clip(sid.astype(jnp.int32), 0, N - 1)
    sid_p = sid_c if b_pad == B else jnp.pad(sid_c, (0, b_pad - B))

    table_bytes = N * d_pad * itemsize
    out_bytes = b_pad * d_pad * itemsize
    # Table (single-buffered, constant block) + double-buffered output tiles
    # + SMEM sids, with 2x headroom, floored at 4 MiB.
    vmem_needed = table_bytes + 2 * tb * d_pad * itemsize + 4 * b_pad
    vmem_limit = int(min(100 * 1024 * 1024, max(4 * 1024 * 1024, 2 * vmem_needed)))

    grid = (b_pad // tb,)

    out = pl.pallas_call(
        functools.partial(_emb_gather_kernel, tb=tb),
        out_shape=jax.ShapeDtypeStruct((b_pad, d_pad), weight.dtype),
        grid_spec=pltpu.PrefetchScalarGridSpec(
            num_scalar_prefetch=1,
            grid=grid,
            # Constant block index -> table is DMA'd once and stays in VMEM.
            in_specs=[pl.BlockSpec((N, d_pad), lambda i, sid_ref: (0, 0))],
            out_specs=pl.BlockSpec((tb, d_pad), lambda i, sid_ref: (i, 0)),
        ),
        compiler_params=pltpu.CompilerParams(
            dimension_semantics=("parallel",),
            vmem_limit_bytes=vmem_limit,
        ),
        cost_estimate=pl.CostEstimate(
            flops=0,
            transcendentals=0,
            bytes_accessed=table_bytes + out_bytes + 4 * b_pad,
        ),
    )(sid_p, w_pad)

    return out[:B, :D]


# ------------------------- forward-pass semantics -------------------------- #

def custom_speaker_emb_forward(weight, initialized, sid, cropped_waveform, g_enc):
    """Mirrors CustomSpeakerEmb.forward.

    weight:       [num_speaker, D]  emb_s.weight
    initialized:  [num_speaker]     1.0 = not yet initialized (as in PyTorch)
    sid:          [B] int32
    g_enc:        [num_speaker, D]  stand-in for speaker_encoder(w2v features)
    Returns (g, new_weight, new_initialized).
    """
    # TODO(synk): w2v_extractor.reduced_forward and speaker_encoder are external
    # submodules with no definition in the reference file; `g_enc` is a
    # deterministic synthetic stand-in for their output.
    del cropped_waveform  # consumed only by the external extractor in PyTorch

    def init_branch(state):
        w, init = state

        def body(carry, s):
            w, init = carry
            do = init[s] == 1.0  # duplicate-aware, exactly like the Python loop
            # Row-scoped updates: O(D) per step instead of O(N*D) full selects.
            w = w.at[s].set(jnp.where(do, g_enc[s], w[s]))
            init = init.at[s].set(jnp.where(do, 0.0, init[s]))
            return (w, init), None

        (w, init), _ = jax.lax.scan(body, (w, init), sid)
        return w, init

    weight, initialized = jax.lax.cond(
        initialized.sum() > 0, init_branch, lambda s: s, (weight, initialized))

    g = embedding_lookup(weight, sid)   # <-- Pallas hot path
    return g, weight, initialized


# ---------------------------------- main ----------------------------------- #

if __name__ == "__main__":
    num_speaker = 8
    speaker_embedding_dim = 32
    batch = 4
    wav_len = 256

    key = jax.random.PRNGKey(0)
    k_w, k_g, k_wav = jax.random.split(key, 3)

    # nn.Embedding(num_speaker, speaker_embedding_dim) weight, deterministic init.
    emb_weight = jax.random.normal(
        k_w, (num_speaker, speaker_embedding_dim), dtype=jnp.float32)
    # Constructor default initialized=False -> buffer of ones (all "uninitialized").
    initialized = jnp.ones((num_speaker,), dtype=jnp.float32)

    sid = jnp.array([1, 3, 3, 6], dtype=jnp.int32)  # includes a duplicate
    cropped_waveform = jax.random.normal(k_wav, (batch, wav_len), dtype=jnp.float32)
    # Synthetic speaker-encoder output (indexed by speaker id, as g[s] in PyTorch).
    g_enc = jax.random.normal(
        k_g, (num_speaker, speaker_embedding_dim), dtype=jnp.float32)

    g, new_weight, new_initialized = custom_speaker_emb_forward(
        emb_weight, initialized, sid, cropped_waveform, g_enc)
    g = jax.block_until_ready(g)

    # Pure-JAX reference of the same semantics.
    ref_weight = emb_weight
    ref_init = initialized
    for s in [1, 3, 3, 6]:
        if float(ref_init[s]) == 1.0:
            ref_weight = ref_weight.at[s].set(g_enc[s])
            ref_init = ref_init.at[s].set(0.0)
    ref_g = ref_weight[sid]

    assert g.shape == (batch, speaker_embedding_dim)
    assert jnp.allclose(g, ref_g, atol=1e-6), "embedding lookup mismatch"
    assert jnp.allclose(new_weight, ref_weight, atol=1e-6), "weight update mismatch"
    assert jnp.allclose(new_initialized, ref_init), "initialized flags mismatch"

    print("KERNEL_OK")
</pallas_src>

<mosaic_0001>
module attributes {stable_mosaic.version = 11 : i64} {
  func.func @_emb_gather_kernel(%arg0: i32, %arg1: memref<8xi32, #tpu.memory_space<smem>>, %arg2: memref<8x128xf32, #tpu.memory_space<vmem>>, %arg3: memref<8x128xf32, #tpu.memory_space<vmem>>) attributes {dimension_semantics = [#tpu.dimension_semantics<parallel>], iteration_bounds = array<i64: 1>, scalar_prefetch = 1 : i64, scratch_operands = 0 : i64, tpu.core_type = #tpu.core_type<tc>, window_params = [{pipeline_mode = #tpu.pipeline_mode<synchronous>, transform_indices = @transform_0, window_bounds = array<i64: 8, 128>}, {transform_indices = @transform_1, window_bounds = array<i64: 8, 128>}]} {
    %c8_i32 = arith.constant 8 : i32
    %0 = arith.muli %arg0, %c8_i32 : i32
    %c0_i32 = arith.constant 0 : i32
    %1 = arith.addi %0, %c0_i32 : i32
    %2 = arith.index_cast %1 : i32 to index
    %3 = memref.load %arg1[%2] : memref<8xi32, #tpu.memory_space<smem>>
    %4 = arith.index_cast %3 : i32 to index
    %c0 = arith.constant 0 : index
    %5 = vector.load %arg2[%4, %c0] : memref<8x128xf32, #tpu.memory_space<vmem>>, vector<1x128xf32>
    %c1_i32 = arith.constant 1 : i32
    %6 = arith.addi %0, %c1_i32 : i32
    %7 = arith.index_cast %6 : i32 to index
    %8 = memref.load %arg1[%7] : memref<8xi32, #tpu.memory_space<smem>>
    %9 = arith.index_cast %8 : i32 to index
    %c0_0 = arith.constant 0 : index
    %10 = vector.load %arg2[%9, %c0_0] : memref<8x128xf32, #tpu.memory_space<vmem>>, vector<1x128xf32>
    %c2_i32 = arith.constant 2 : i32
    %11 = arith.addi %0, %c2_i32 : i32
    %12 = arith.index_cast %11 : i32 to index
    %13 = memref.load %arg1[%12] : memref<8xi32, #tpu.memory_space<smem>>
    %14 = arith.index_cast %13 : i32 to index
    %c0_1 = arith.constant 0 : index
    %15 = vector.load %arg2[%14, %c0_1] : memref<8x128xf32, #tpu.memory_space<vmem>>, vector<1x128xf32>
    %c3_i32 = arith.constant 3 : i32
    %16 = arith.addi %0, %c3_i32 : i32
    %17 = arith.index_cast %16 : i32 to index
    %18 = memref.load %arg1[%17] : memref<8xi32, #tpu.memory_space<smem>>
    %19 = arith.index_cast %18 : i32 to index
    %c0_2 = arith.constant 0 : index
    %20 = vector.load %arg2[%19, %c0_2] : memref<8x128xf32, #tpu.memory_space<vmem>>, vector<1x128xf32>
    %c4_i32 = arith.constant 4 : i32
    %21 = arith.addi %0, %c4_i32 : i32
    %22 = arith.index_cast %21 : i32 to index
    %23 = memref.load %arg1[%22] : memref<8xi32, #tpu.memory_space<smem>>
    %24 = arith.index_cast %23 : i32 to index
    %c0_3 = arith.constant 0 : index
    %25 = vector.load %arg2[%24, %c0_3] : memref<8x128xf32, #tpu.memory_space<vmem>>, vector<1x128xf32>
    %c5_i32 = arith.constant 5 : i32
    %26 = arith.addi %0, %c5_i32 : i32
    %27 = arith.index_cast %26 : i32 to index
    %28 = memref.load %arg1[%27] : memref<8xi32, #tpu.memory_space<smem>>
    %29 = arith.index_cast %28 : i32 to index
    %c0_4 = arith.constant 0 : index
    %30 = vector.load %arg2[%29, %c0_4] : memref<8x128xf32, #tpu.memory_space<vmem>>, vector<1x128xf32>
    %c6_i32 = arith.constant 6 : i32
    %31 = arith.addi %0, %c6_i32 : i32
    %32 = arith.index_cast %31 : i32 to index
    %33 = memref.load %arg1[%32] : memref<8xi32, #tpu.memory_space<smem>>
    %34 = arith.index_cast %33 : i32 to index
    %c0_5 = arith.constant 0 : index
    %35 = vector.load %arg2[%34, %c0_5] : memref<8x128xf32, #tpu.memory_space<vmem>>, vector<1x128xf32>
    %c7_i32 = arith.constant 7 : i32
    %36 = arith.addi %0, %c7_i32 : i32
    %37 = arith.index_cast %36 : i32 to index
    %38 = memref.load %arg1[%37] : memref<8xi32, #tpu.memory_space<smem>>
    %39 = arith.index_cast %38 : i32 to index
    %c0_6 = arith.constant 0 : index
    %40 = vector.load %arg2[%39, %c0_6] : memref<8x128xf32, #tpu.memory_space<vmem>>, vector<1x128xf32>
    %41 = tpu.concatenate %5, %10, %15, %20, %25, %30, %35, %40 in 0 : vector<1x128xf32>, vector<1x128xf32>, vector<1x128xf32>, vector<1x128xf32>, vector<1x128xf32>, vector<1x128xf32>, vector<1x128xf32>, vector<1x128xf32> -> vector<8x128xf32>
    %c0_7 = arith.constant 0 : index
    %c0_8 = arith.constant 0 : index
    %42 = vector.load %arg3[%c0_7, %c0_8] : memref<8x128xf32, #tpu.memory_space<vmem>>, vector<8x128xf32>
    tpu.vector_store %arg3[%c0_7, %c0_8], %41 {strides = array<i32>} : memref<8x128xf32, #tpu.memory_space<vmem>>, vector<8x128xf32>,
    return
  }
  func.func @transform_0(%arg0: i32, %arg1: memref<8xi32, #tpu.memory_space<smem>>) -> (i32, i32) {
    %c0_i32 = arith.constant 0 : i32
    %c0_i32_0 = arith.constant 0 : i32
    %c0_i32_1 = arith.constant 0 : i32
    return %c0_i32, %c0_i32_0 : i32, i32
  }
  func.func @transform_1(%arg0: i32, %arg1: memref<8xi32, #tpu.memory_space<smem>>) -> (i32, i32) {
    %c0_i32 = arith.constant 0 : i32
    %c0_i32_0 = arith.constant 0 : i32
    return %arg0, %c0_i32 : i32, i32
  }
}

</mosaic_0001>

<bundles_post_ra>
// kernel: tpu_custom_call.1
= control target key start
LH: loop header
LB: loop body
LE: loop exit
PB: predicated region body
PF: predicated region fallthrough
CT: control target
= control target key end

     0   :  { %s242_s0 = inlined_call_operand.hbm [shape: s32[8], index: 0, kind: input, shape index: {}]   ;;  %s243_s1 = inlined_call_operand.hbm [shape: f32[8,128], index: 1, kind: input, shape index: {}]   ;;  %s244_s2 = inlined_call_operand.hbm [shape: f32[8,128], index: 2, kind: output, shape index: {}]  }
   0x1   :  { %s127_s11 = scalar_lea.hbm %s242_s0, 16 }
   0x2   :  { %p128_p0 = scmp.ne.s32.totalorder %s242_s0, %s127_s11  ;;  %p131_p1 = scmp.lt.u32.totalorder %s127_s11, %s242_s0 }
   0x4   :  { %p133_p2 = pnand %p131_p1, %p128_p0 }
   0x6   :  { %136 = shalt.err (!%p133_p2)  }
   0x7   :  { %s187_s16 = smov [#allocation3]  }
   0x8   :  { %8 = dma.hbm_to_smem %s242_s0, 16, %s187_s16, [#allocation2] }
   0x9   :  { %181 = dma.done.wait [#allocation2], 16 }
   0xa   :  { %182 = vsyncadd [#allocation2], 4294967280 }
   0xb   :  { %10 = sfence }
   0xc   :  { %11 = vsyncpa [#allocation5], 0 }
   0xd   :  { %12 = vsyncpa [#allocation6], 0  ;;  %s188_s19 = smov [#allocation4]   ;;  %s137_s23 = scalar_lea.hbm %s243_s1, 128 }
   0xe   :  { %s19_s20 = sshll.u32 %s188_s19, 4  ;;  %p138_p3 = scmp.ne.s32.totalorder %s243_s1, %s137_s23  ;;  %s20_s20 = int_to_ptr.vmem [resolvable:$true] %s19_s20 }
   0xf   :  { %p141_p4 = scmp.lt.u32.totalorder %s137_s23, %s243_s1 }
  0x11   :  { %p143_p5 = pnand %p141_p4, %p138_p3 }
  0x13   :  { %146 = shalt.err (!%p143_p5)
}
  0x14   :  { %s147_s0 = scalar_lea.vmem %s20_s20, 128  ;;  %p152_p7 = scmp.lt.s32.totalorder %s20_s20, %s20_s20 }
  0x15   :  { %p148_p6 = scmp.ne.s32.totalorder %s20_s20, %s147_s0  ;;  %p153_p8 = scmp.lt.s32.totalorder %s147_s0, %s147_s0 }
  0x17   :  { %p154_p9 = por %p153_p8, %p152_p7 }
  0x19   :  { %p155_p10 = pnand %p154_p9, %p148_p6 }
  0x1b   :  { %158 = shalt.err (!%p155_p10)
}
  0x1c   :  { %22 = dma.hbm_to_vmem [thread:$0]  %s243_s1, 128, %s20_s20, [#allocation5]  }
  0x1d   :  { %183 = dma.done.wait [#allocation5], 128  }
  0x1e   :  { %184 = vsyncadd [#allocation5], 4294967168  ;;  %s27_s30 = sld [smem:[#allocation3]]  ;;  %s117_s3 = sld [smem:[#allocation3 + $0x1]]  ;;  %vm79_vm0 = vcmask 1040384   ;;  %vm81_vm1 = vcmask 1041408  }
  0x1f   :  { %s118_s4 = sld [smem:[#allocation3 + $0x2]]  ;;  %s119_s5 = sld [smem:[#allocation3 + $0x3]]  ;;  %vm83_vm2 = vcmask 1042432   ;;  %vm85_vm3 = vcmask 1043456   ;;  %vm87_vm4 = vcmask 1044480   ;;  %vm89_vm5 = vcmask 1045504  }
  0x20   :  { %s120_s6 = sld [smem:[#allocation3 + $0x4]]  ;;  %s121_s7 = sld [smem:[#allocation3 + $0x5]]  ;;  %vm91_vm6 = vcmask 1046528  }
  0x21   :  { %s122_s8 = sld [smem:[#allocation3 + $0x6]]  ;;  %s123_s9 = sld [smem:[#allocation3 + $0x7]] }
  0x22   :  { %s189_s17 = smov [#allocation7]  }
  0x23   :  { %s100_s18 = sshll.u32 %s189_s17, 4  ;;  %s101_s18 = int_to_ptr.vmem [resolvable:$true] %s100_s18 }
  0x24   :  { %s28_s10 = scalar_lea.vmem [#allocation4], %s27_s30  ;;  %s32_s11 = scalar_lea.vmem [#allocation4], %s117_s3 }
  0x25   :  { %v29_v0 = vld [vmem:[%s28_s10] sm:$0x1]  ;;  %s36_s12 = scalar_lea.vmem [#allocation4], %s118_s4  ;;  %s40_s13 = scalar_lea.vmem [#allocation4], %s119_s5 }
  0x26   :  { %v33_v1 = vld [vmem:[%s32_s11] sm:$0x1]  ;;  %s44_s1 = scalar_lea.vmem [#allocation4], %s120_s6  ;;  %s48_s14 = scalar_lea.vmem [#allocation4], %s121_s7 }
  0x27   :  { %v37_v2 = vld [vmem:[%s36_s12] sm:$0x1]  ;;  %s52_s15 = scalar_lea.vmem [#allocation4], %s122_s8  ;;  %v59_v7 = vrot.slane %v33_v1, 7  ;;  %s56_s16 = scalar_lea.vmem [#allocation4], %s123_s9 }
  0x28   :  { %v41_v3 = vld [vmem:[%s40_s13] sm:$0x1]  ;;  %v62_v8 = vrot.slane %v37_v2, 6  ;;  %s159_s19 = scalar_lea.vmem %s101_s18, 128  ;;  %p164_p12 = scmp.lt.s32.totalorder %s101_s18, %s101_s18 }
  0x29   :  { %v45_v4 = vld [vmem:[%s44_s1] sm:$0x1]  ;;  %v65_v10 = vrot.slane %v41_v3, 5  ;;  %v80_v13 = vsel %vm79_vm0, %v29_v0, %v59_v7  ;;  %p160_p11 = scmp.ne.s32.totalorder %s101_s18, %s159_s19  ;;  %p165_p13 = scmp.lt.s32.totalorder %s159_s19, %s159_s19 }
  0x2a   :  { %v49_v5 = vld [vmem:[%s48_s14] sm:$0x1]  ;;  %v68_v11 = vrot.slane %v45_v4, 4  ;;  %v82_v15 = vsel %vm81_vm1, %v80_v13, %v62_v8 }
  0x2b   :  { %v53_v6 = vld [vmem:[%s52_s15] sm:$0x1]  ;;  %v71_v12 = vrot.slane %v49_v5, 3  ;;  %v84_v17 = vsel %vm83_vm2, %v82_v15, %v65_v10  ;;  %p166_p0 = por %p165_p13, %p164_p12 }
  0x2c   :  { %v57_v9 = vld [vmem:[%s56_s16] sm:$0x1]  ;;  %v74_v14 = vrot.slane %v53_v6, 2  ;;  %v86_v18 = vsel %vm85_vm3, %v84_v17, %v68_v11 }
  0x2d   :  { %v77_v16 = vrot.slane %v57_v9, 1  ;;  %v88_v19 = vsel %vm87_vm4, %v86_v18, %v71_v12  ;;  %p167_p1 = pnand %p166_p0, %p160_p11 }
  0x2e   :  { %v90_v20 = vsel %vm89_vm5, %v88_v19, %v74_v14 }
  0x2f   :  { %v92_v21 = vsel %vm91_vm6, %v90_v20, %v77_v16 }
  0x30   :  { %93 = vst [vmem:[#allocation7] sm:$0xff] %v92_v21 }
  0x31   :  { %170 = shalt.err (!%p167_p1)
}
  0x32   :  { %s171_s22 = scalar_lea.hbm %s244_s2, 128 }
  0x33   :  { %p172_p2 = scmp.ne.s32.totalorder %s244_s2, %s171_s22  ;;  %p175_p3 = scmp.lt.u32.totalorder %s171_s22, %s244_s2 }
  0x35   :  { %p177_p4 = pnand %p175_p3, %p172_p2 }
  0x37   :  { %180 = shalt.err (!%p177_p4)
}
  0x38   :  { %103 = dma.vmem_to_hbm [thread:$0]  %s101_s18, 128, %s244_s2, [#allocation6]  }
  0x39   :  { %185 = dma.done.wait [#allocation6], 128  }
  0x3a   :  { %186 = vsyncadd [#allocation6], 4294967168 }
  0x3b   :  { %107 = vsyncpa [#allocation5], 1 }
  0x3c   :  { %108 = vsyncpa [#allocation6], 1 }

</bundles_post_ra>
